<compile_context>
chip_gen: v7x
topology: tpu7x:2x2x1
jax: 0.10.0
libtpu: 0.0.40
codegen_flags: <defaults>
</compile_context>

<pallas_src>
import functools

import jax
import jax.numpy as jnp
from jax.experimental import pallas as pl
from jax.experimental.pallas import tpu as pltpu


# Layer dims exactly as in the PyTorch module (rep_learner layers, then regressor).
_LAYER_DIMS = [(38, 76), (76, 152), (152, 304), (304, 304), (304, 152), (152, 1)]
_N_LAYERS = len(_LAYER_DIMS)


def _fused_mlp_kernel(*refs, n_layers):
    """refs = (x_ref, w0, b0, w1, b1, ..., w5, b5, o_ref). Whole net, one kernel."""
    x_ref = refs[0]
    o_ref = refs[-1]
    wb = refs[1:-1]

    h = x_ref[...]                                   # (B, 38) f32
    for i in range(n_layers):
        w = wb[2 * i][...]                           # (Din, Dout) bf16
        b = wb[2 * i + 1][...]                       # (1, Dout)   f32
        y = jnp.dot(h.astype(w.dtype), w,
                    preferred_element_type=jnp.float32)   # MXU bf16 feed, f32 acc
        y = y + b
        if i < n_layers - 1:                         # ReLU on rep_learner layers only
            y = jnp.maximum(y, 0.0)
        # Dropout(p=DO) is identity at inference time (eval mode).
        h = y
    o_ref[...] = h.astype(o_ref.dtype)


def init_params(key):
    """PyTorch Linear default init (uniform +-1/sqrt(fan_in)); weights stored bf16."""
    params = []
    keys = jax.random.split(key, 2 * _N_LAYERS)
    for li, (din, dout) in enumerate(_LAYER_DIMS):
        bound = 1.0 / (din ** 0.5)
        w = jax.random.uniform(keys[2 * li], (din, dout), jnp.float32,
                               minval=-bound, maxval=bound).astype(jnp.bfloat16)
        b = jax.random.uniform(keys[2 * li + 1], (1, dout), jnp.float32,
                               minval=-bound, maxval=bound)
        params.append((w, b))
    return params


@jax.jit
def mlp_reg5b_doal_forward(x, params):
    """Fused forward pass of MLPReg5bDoal (eval mode: dropout = identity)."""
    B = x.shape[0]
    flat = []
    for w, b in params:
        flat.extend((w, b))

    kernel = functools.partial(_fused_mlp_kernel, n_layers=len(params))
    vmem = pl.BlockSpec(memory_space=pltpu.MemorySpace.VMEM)
    return pl.pallas_call(
        kernel,
        in_specs=[vmem] * (1 + len(flat)),
        out_specs=vmem,
        out_shape=jax.ShapeDtypeStruct((B, _LAYER_DIMS[-1][1]), x.dtype),
    )(x, *flat)


def reference_forward(x, params):
    """Pure-JAX reference with the identical numeric path (bf16 dot, f32 acc)."""
    h = x
    n = len(params)
    for i, (w, b) in enumerate(params):
        y = jnp.dot(h.astype(w.dtype), w, preferred_element_type=jnp.float32) + b
        if i < n - 1:
            y = jnp.maximum(y, 0.0)
        h = y
    return h


if __name__ == "__main__":
    key = jax.random.PRNGKey(0)
    k_x, k_p = jax.random.split(key)

    batch = 8
    x = jax.random.normal(k_x, (batch, 38), jnp.float32)
    params = init_params(k_p)

    out = mlp_reg5b_doal_forward(x, params)
    out = jax.block_until_ready(out)

    assert out.shape == (batch, 1), out.shape

    ref = reference_forward(x, params)
    assert jnp.allclose(out, ref, atol=5e-3, rtol=5e-3), (
        "mismatch vs reference: max abs diff "
        f"{float(jnp.max(jnp.abs(out - ref)))}"
    )

    print("KERNEL_OK")
</pallas_src>

<mosaic_0001>
module attributes {stable_mosaic.version = 11 : i64} {
  func.func @_fused_mlp_kernel(%arg0: memref<8x38xf32, #tpu.memory_space<vmem>>, %arg1: memref<38x76xbf16, #tpu.memory_space<vmem>>, %arg2: memref<1x76xf32, #tpu.memory_space<vmem>>, %arg3: memref<76x152xbf16, #tpu.memory_space<vmem>>, %arg4: memref<1x152xf32, #tpu.memory_space<vmem>>, %arg5: memref<152x304xbf16, #tpu.memory_space<vmem>>, %arg6: memref<1x304xf32, #tpu.memory_space<vmem>>, %arg7: memref<304x304xbf16, #tpu.memory_space<vmem>>, %arg8: memref<1x304xf32, #tpu.memory_space<vmem>>, %arg9: memref<304x152xbf16, #tpu.memory_space<vmem>>, %arg10: memref<1x152xf32, #tpu.memory_space<vmem>>, %arg11: memref<152x1xbf16, #tpu.memory_space<vmem>>, %arg12: memref<1x1xf32, #tpu.memory_space<vmem>>, %arg13: memref<8x1xf32, #tpu.memory_space<vmem>>) attributes {dimension_semantics = [], scalar_prefetch = 0 : i64, scratch_operands = 0 : i64, tpu.core_type = #tpu.core_type<tc>} {
    %c0 = arith.constant 0 : index
    %c0_0 = arith.constant 0 : index
    %0 = vector.load %arg0[%c0, %c0_0] : memref<8x38xf32, #tpu.memory_space<vmem>>, vector<8x38xf32>
    %c0_1 = arith.constant 0 : index
    %c0_2 = arith.constant 0 : index
    %1 = vector.load %arg1[%c0_1, %c0_2] : memref<38x76xbf16, #tpu.memory_space<vmem>>, vector<38x76xbf16>
    %c0_3 = arith.constant 0 : index
    %c0_4 = arith.constant 0 : index
    %2 = vector.load %arg2[%c0_3, %c0_4] : memref<1x76xf32, #tpu.memory_space<vmem>>, vector<1x76xf32>
    %3 = arith.truncf %0 : vector<8x38xf32> to vector<8x38xbf16>
    %cst = arith.constant dense<0.000000e+00> : vector<8x76xf32>
    %4 = tpu.matmul %3, %1, %cst {dimension_numbers = #tpu.dot_dimension_numbers<[1], [0], [0], [1], [0, 0, 1, 1], [], []>} : vector<8x38xbf16>, vector<38x76xbf16>, vector<8x76xf32> -> vector<8x76xf32>
    %5 = vector.broadcast %2 : vector<1x76xf32> to vector<8x76xf32>
    %6 = arith.addf %4, %5 : vector<8x76xf32>
    %cst_5 = arith.constant 0.000000e+00 : f32
    %7 = vector.broadcast %cst_5 : f32 to vector<8x76xf32>
    %8 = arith.maximumf %6, %7 : vector<8x76xf32>
    %c0_6 = arith.constant 0 : index
    %c0_7 = arith.constant 0 : index
    %9 = vector.load %arg3[%c0_6, %c0_7] : memref<76x152xbf16, #tpu.memory_space<vmem>>, vector<76x152xbf16>
    %c0_8 = arith.constant 0 : index
    %c0_9 = arith.constant 0 : index
    %10 = vector.load %arg4[%c0_8, %c0_9] : memref<1x152xf32, #tpu.memory_space<vmem>>, vector<1x152xf32>
    %11 = arith.truncf %8 : vector<8x76xf32> to vector<8x76xbf16>
    %cst_10 = arith.constant dense<0.000000e+00> : vector<8x152xf32>
    %12 = tpu.matmul %11, %9, %cst_10 {dimension_numbers = #tpu.dot_dimension_numbers<[1], [0], [0], [1], [0, 0, 1, 1], [], []>} : vector<8x76xbf16>, vector<76x152xbf16>, vector<8x152xf32> -> vector<8x152xf32>
    %13 = vector.broadcast %10 : vector<1x152xf32> to vector<8x152xf32>
    %14 = arith.addf %12, %13 : vector<8x152xf32>
    %cst_11 = arith.constant 0.000000e+00 : f32
    %15 = vector.broadcast %cst_11 : f32 to vector<8x152xf32>
    %16 = arith.maximumf %14, %15 : vector<8x152xf32>
    %c0_12 = arith.constant 0 : index
    %c0_13 = arith.constant 0 : index
    %17 = vector.load %arg5[%c0_12, %c0_13] : memref<152x304xbf16, #tpu.memory_space<vmem>>, vector<152x304xbf16>
    %c0_14 = arith.constant 0 : index
    %c0_15 = arith.constant 0 : index
    %18 = vector.load %arg6[%c0_14, %c0_15] : memref<1x304xf32, #tpu.memory_space<vmem>>, vector<1x304xf32>
    %19 = arith.truncf %16 : vector<8x152xf32> to vector<8x152xbf16>
    %cst_16 = arith.constant dense<0.000000e+00> : vector<8x304xf32>
    %20 = tpu.matmul %19, %17, %cst_16 {dimension_numbers = #tpu.dot_dimension_numbers<[1], [0], [0], [1], [0, 0, 1, 1], [], []>} : vector<8x152xbf16>, vector<152x304xbf16>, vector<8x304xf32> -> vector<8x304xf32>
    %21 = vector.broadcast %18 : vector<1x304xf32> to vector<8x304xf32>
    %22 = arith.addf %20, %21 : vector<8x304xf32>
    %cst_17 = arith.constant 0.000000e+00 : f32
    %23 = vector.broadcast %cst_17 : f32 to vector<8x304xf32>
    %24 = arith.maximumf %22, %23 : vector<8x304xf32>
    %c0_18 = arith.constant 0 : index
    %c0_19 = arith.constant 0 : index
    %25 = vector.load %arg7[%c0_18, %c0_19] : memref<304x304xbf16, #tpu.memory_space<vmem>>, vector<304x304xbf16>
    %c0_20 = arith.constant 0 : index
    %c0_21 = arith.constant 0 : index
    %26 = vector.load %arg8[%c0_20, %c0_21] : memref<1x304xf32, #tpu.memory_space<vmem>>, vector<1x304xf32>
    %27 = arith.truncf %24 : vector<8x304xf32> to vector<8x304xbf16>
    %cst_22 = arith.constant dense<0.000000e+00> : vector<8x304xf32>
    %28 = tpu.matmul %27, %25, %cst_22 {dimension_numbers = #tpu.dot_dimension_numbers<[1], [0], [0], [1], [0, 0, 1, 1], [], []>} : vector<8x304xbf16>, vector<304x304xbf16>, vector<8x304xf32> -> vector<8x304xf32>
    %29 = vector.broadcast %26 : vector<1x304xf32> to vector<8x304xf32>
    %30 = arith.addf %28, %29 : vector<8x304xf32>
    %cst_23 = arith.constant 0.000000e+00 : f32
    %31 = vector.broadcast %cst_23 : f32 to vector<8x304xf32>
    %32 = arith.maximumf %30, %31 : vector<8x304xf32>
    %c0_24 = arith.constant 0 : index
    %c0_25 = arith.constant 0 : index
    %33 = vector.load %arg9[%c0_24, %c0_25] : memref<304x152xbf16, #tpu.memory_space<vmem>>, vector<304x152xbf16>
    %c0_26 = arith.constant 0 : index
    %c0_27 = arith.constant 0 : index
    %34 = vector.load %arg10[%c0_26, %c0_27] : memref<1x152xf32, #tpu.memory_space<vmem>>, vector<1x152xf32>
    %35 = arith.truncf %32 : vector<8x304xf32> to vector<8x304xbf16>
    %cst_28 = arith.constant dense<0.000000e+00> : vector<8x152xf32>
    %36 = tpu.matmul %35, %33, %cst_28 {dimension_numbers = #tpu.dot_dimension_numbers<[1], [0], [0], [1], [0, 0, 1, 1], [], []>} : vector<8x304xbf16>, vector<304x152xbf16>, vector<8x152xf32> -> vector<8x152xf32>
    %37 = vector.broadcast %34 : vector<1x152xf32> to vector<8x152xf32>
    %38 = arith.addf %36, %37 : vector<8x152xf32>
    %cst_29 = arith.constant 0.000000e+00 : f32
    %39 = vector.broadcast %cst_29 : f32 to vector<8x152xf32>
    %40 = arith.maximumf %38, %39 : vector<8x152xf32>
    %c0_30 = arith.constant 0 : index
    %c0_31 = arith.constant 0 : index
    %41 = vector.load %arg11[%c0_30, %c0_31] : memref<152x1xbf16, #tpu.memory_space<vmem>>, vector<152x1xbf16>
    %c0_32 = arith.constant 0 : index
    %c0_33 = arith.constant 0 : index
    %42 = vector.load %arg12[%c0_32, %c0_33] : memref<1x1xf32, #tpu.memory_space<vmem>>, vector<1x1xf32>
    %43 = arith.truncf %40 : vector<8x152xf32> to vector<8x152xbf16>
    %cst_34 = arith.constant dense<0.000000e+00> : vector<8x1xf32>
    %44 = tpu.matmul %43, %41, %cst_34 {dimension_numbers = #tpu.dot_dimension_numbers<[1], [0], [0], [1], [0, 0, 1, 1], [], []>} : vector<8x152xbf16>, vector<152x1xbf16>, vector<8x1xf32> -> vector<8x1xf32>
    %45 = vector.broadcast %42 : vector<1x1xf32> to vector<8x1xf32>
    %46 = arith.addf %44, %45 : vector<8x1xf32>
    %c0_35 = arith.constant 0 : index
    %c0_36 = arith.constant 0 : index
    %47 = vector.load %arg13[%c0_35, %c0_36] : memref<8x1xf32, #tpu.memory_space<vmem>>, vector<8x1xf32>
    tpu.vector_store %arg13[%c0_35, %c0_36], %46 {strides = array<i32>} : memref<8x1xf32, #tpu.memory_space<vmem>>, vector<8x1xf32>,
    return
  }
}

</mosaic_0001>

<bundles_post_ra>
// kernel: mlp_reg5b_doal_forward.1
= control target key start
LH: loop header
LB: loop body
LE: loop exit
PB: predicated region body
PF: predicated region fallthrough
CT: control target
= control target key end

     0   :  { %v2018_v0 = vmov 0.0   ;;  %vm2019_vm0 = vmmov 0   ;;  %vm80_vm1 = vcmask 1042432   ;;  %vm76_vm2 = vcmask 310272   ;;  %s2620_s1 = inlined_call_operand.vmem [shape: bf16[38,76], index: 1, kind: input, shape index: {}]   ;;  %s2621_s3 = inlined_call_operand.vmem [shape: bf16[76,152], index: 3, kind: input, shape index: {}]   ;;  %s2622_s0 = inlined_call_operand.vmem [shape: f32[8,38], index: 0, kind: input, shape index: {}]   ;;  %s2623_s5 = inlined_call_operand.vmem [shape: bf16[152,304], index: 5, kind: input, shape index: {}]   ;;  %s2624_s2 = inlined_call_operand.vmem [shape: f32[1,76], index: 2, kind: input, shape index: {}]   ;;  %s2625_s7 = inlined_call_operand.vmem [shape: bf16[304,304], index: 7, kind: input, shape index: {}]   ;;  %s2626_s4 = inlined_call_operand.vmem [shape: f32[1,152], index: 4, kind: input, shape index: {}]   ;;  %s2627_s9 = inlined_call_operand.vmem [shape: bf16[304,152], index: 9, kind: input, shape index: {}]   ;;  %s2628_s6 = inlined_call_operand.vmem [shape: f32[1,304], index: 6, kind: input, shape index: {}]   ;;  %s2629_s11 = inlined_call_operand.vmem [shape: bf16[152,1], index: 11, kind: input, shape index: {}]   ;;  %s2630_s8 = inlined_call_operand.vmem [shape: f32[1,304], index: 8, kind: input, shape index: {}]   ;;  %s2631_s12 = inlined_call_operand.<no memory space> [shape: f32[1,1], index: 12, kind: input, shape index: {}]   ;;  %s2632_s10 = inlined_call_operand.vmem [shape: f32[1,152], index: 10, kind: input, shape index: {}]   ;;  %s2633_s13 = inlined_call_operand.vmem [shape: f32[8,1], index: 13, kind: output, shape index: {}]  }
   0x1   :  { %1783 = vmatprep.subr.bf16.mxu0 %v2018_v0  ;;  %v1818_v1 = vld [vmem:[%s2620_s1] sm:$0xff]   ;;  %1789 = vmatprep.mubr.msk.bf16.mxu0 %vm2019_vm0, %v2018_v0  ;;  %v1819_v2 = vld [vmem:[%s2620_s1 + $0x8] sm:$0xff]   ;;  %v1820_v3 = vld [vmem:[%s2620_s1 + $0x10] ss:$0 sps:$4 sm:$0x77]   ;;  %vm200_vm3 = vcmask 1045504   ;;  %v138_v62 = vlaneseq }
   0x2   :  { %1784 = vmatpush3.bf16.msra.mxu0 %v1818_v1  ;;  %v1821_v4 = vld [vmem:[%s2621_s3 + $0x4] ss:$8 sps:$4 sm:$0xff]   ;;  %v1823_v5 = vld [vmem:[%s2621_s3] ss:$8 sps:$4 sm:$0xff]   ;;  %v1824_v6 = vld [vmem:[%s2621_s3 + $0x14] ss:$8 sps:$4 sm:$0xff]  }
   0x3   :  { %1785 = vmatprep.subr.bf16.mxu0 %v2018_v0  ;;  %207 = vmatprep.subr.bf16.mxu1 %v1821_v4  ;;  %v47_v7 = vld [vmem:[%s2622_s0] sm:$0xff]  ;;  %v1826_v8 = vld [vmem:[%s2621_s3 + $0x10] ss:$8 sps:$4 sm:$0xff]   ;;  %v82_v9 = vsel %vm80_vm1, %v1820_v3, 0  ;;  %v1830_v13 = vld [vmem:[%s2621_s3 + $0x34] ss:$8 sps:$4 sm:$0xff]  }
   0x4   :  { %208 = vmatpush1.bf16.msra.mxu1 %v1823_v5  ;;  %v1827_v10 = vld [vmem:[%s2621_s3 + $0x24] ss:$8 sps:$4 sm:$0xff]   ;;  %v54_v11 = vpack.c.bf16 %v47_v7, %v47_v7  ;;  %v1829_v12 = vld [vmem:[%s2621_s3 + $0x20] ss:$8 sps:$4 sm:$0xff]   ;;  %v1832_v14 = vld [vmem:[%s2621_s3 + $0x30] ss:$8 sps:$4 sm:$0xff]  }
   0x5   :  { %209 = vmatprep.subr.bf16.mxu1 %v1824_v6  ;;  %v1833_v15 = vld [vmem:[%s2621_s3 + $0x44] ss:$8 sps:$4 sm:$0x3f]   ;;  %v1835_v16 = vld [vmem:[%s2621_s3 + $0x40] ss:$8 sps:$4 sm:$0x3f]  }
   0x6   :  { %1786 = vmatpush3.bf16.msra.mxu0 %v1819_v2  ;;  %v202_v17 = vsel %vm200_vm3, %v1835_v16, 0  ;;  %v2020_v18 = vmov 0   ;;  %v1836_v19 = vld [vmem:[%s2623_s5] ss:$12 sps:$4 sm:$0xff]   ;;  %v1838_v20 = vld [vmem:[%s2623_s5 + $0x4] ss:$12 sps:$4 sm:$0xff]  }
   0x7   :  { %1787 = vmatprep.subr.bf16.mxu0 %v2018_v0  ;;  %239 = vmatprep.mubr.bf16.mxu1 %v2020_v18  ;;  %v1842_v21 = vld [vmem:[%s2623_s5 + $0x1c] ss:$12 sps:$4 sm:$0xff]   ;;  %v1840_v22 = vld [vmem:[%s2623_s5 + $0x18] ss:$12 sps:$4 sm:$0xff]   ;;  %v1846_v23 = vld [vmem:[%s2623_s5 + $0x34] ss:$12 sps:$4 sm:$0xff]  }
   0x8   :  { %210 = vmatpush1.bf16.msra.mxu1 %v1826_v8  ;;  %v1844_v24 = vld [vmem:[%s2623_s5 + $0x30] ss:$12 sps:$4 sm:$0xff]   ;;  %v1850_v25 = vld [vmem:[%s2623_s5 + $0x4c] ss:$12 sps:$4 sm:$0xff]   ;;  %v1848_v26 = vld [vmem:[%s2623_s5 + $0x48] ss:$12 sps:$4 sm:$0xff]  }
   0x9   :  { %211 = vmatprep.subr.bf16.mxu1 %v1827_v10  ;;  %v1854_v27 = vld [vmem:[%s2623_s5 + $0x64] ss:$12 sps:$4 sm:$0xff]   ;;  %v1852_v28 = vld [vmem:[%s2623_s5 + $0x60] ss:$12 sps:$4 sm:$0xff]   ;;  %v1858_v29 = vld [vmem:[%s2623_s5 + $0x7c] ss:$12 sps:$4 sm:$0xff]  }
   0xa   :  { %1788 = vmatpush3.bf16.msra.mxu0 %v82_v9  ;;  %v1856_v30 = vld [vmem:[%s2623_s5 + $0x78] ss:$12 sps:$4 sm:$0xff]   ;;  %v1862_v31 = vld [vmem:[%s2623_s5 + $0x94] ss:$12 sps:$4 sm:$0xff]   ;;  %v1860_v32 = vld [vmem:[%s2623_s5 + $0x90] ss:$12 sps:$4 sm:$0xff]  }
   0xb   :  { %473 = vmatprep.subr.bf16.mxu0 %v1838_v20  ;;  %v1866_v33 = vld [vmem:[%s2623_s5 + $0xac] ss:$12 sps:$4 sm:$0xff]   ;;  %v1864_v34 = vld [vmem:[%s2623_s5 + $0xa8] ss:$12 sps:$4 sm:$0xff]   ;;  %v1593_v35 = vld [vmem:[%s2624_s2] ss:$0 sm:$0xff] }
   0xc   :  { %212 = vmatpush1.bf16.msra.mxu1 %v1829_v12  ;;  %vm196_vm4 = vcmask 621568   ;;  %v1839_v42 = vld [vmem:[%s2623_s5 + $0x8] ss:$12 sps:$4 sm:$0xff]   ;;  %v1843_v44 = vld [vmem:[%s2623_s5 + $0x20] ss:$12 sps:$4 sm:$0xff]   ;;  %v286_v54 = vld [vmem:[%s2623_s5 + $0xd8] sm:$0xff] }
   0xd   :  { %1790 = vmatmul.mubr.msk.bf16.vlgmr.msra.gmra.mrb[0].mxu0 %vm76_vm2, %v54_v11  ;;  %213 = vmatprep.subr.bf16.mxu1 %v1830_v13  ;;  %v1847_v45 = vld [vmem:[%s2623_s5 + $0x38] ss:$12 sps:$4 sm:$0xff]   ;;  %v1851_v46 = vld [vmem:[%s2623_s5 + $0x50] ss:$12 sps:$4 sm:$0xff]   ;;  %v1855_v47 = vld [vmem:[%s2623_s5 + $0x68] ss:$12 sps:$4 sm:$0xff]   ;;  %v1638_v55 = vcombine.high %v286_v54, %v286_v54  ;;  %v1637_v56 = vcombine.low %v286_v54, %v286_v54 }
   0xe   :  { %474 = vmatpush1.bf16.msra.mxu0 %v1836_v19  ;;  %v1859_v48 = vld [vmem:[%s2623_s5 + $0x80] ss:$12 sps:$4 sm:$0xff]   ;;  %v1863_v49 = vld [vmem:[%s2623_s5 + $0x98] ss:$12 sps:$4 sm:$0xff]   ;;  %v1867_v50 = vld [vmem:[%s2623_s5 + $0xb0] ss:$12 sps:$4 sm:$0xff]  }
   0xf   :  { %475 = vmatprep.subr.bf16.mxu0 %v1842_v21  ;;  %v1870_v51 = vld [vmem:[%s2623_s5 + $0xc4] ss:$12 sps:$4 sm:$0xff]   ;;  %v1868_v52 = vld [vmem:[%s2623_s5 + $0xc0] ss:$12 sps:$4 sm:$0xff]   ;;  %v1871_v53 = vld [vmem:[%s2623_s5 + $0xc8] ss:$12 sps:$4 sm:$0xff]  }
  0x10   :  { %214 = vmatpush1.bf16.msra.mxu1 %v1832_v14  ;;  %v1874_v57 = vld [vmem:[%s2623_s5 + $0xe0] ss:$0 sps:$4 sm:$0xff]   ;;  %vm463_vm5 = vcmask 1043456   ;;  %v1877_v60 = vld [vmem:[%s2625_s7 + $0x4] ss:$12 sps:$4 sm:$0xff]   ;;  %v2248_v63 = vshrl.u32 %v138_v62, 7 }
  0x11   :  { %1608 = vmatprep.subr.msk.bf16.mxu1 %vm200_vm3, %v1833_v15  ;;  %v465_v58 = vsel %vm463_vm5, %v1637_v56, 0  ;;  %v471_v59 = vsel %vm463_vm5, %v1874_v57, 0  ;;  %v1902_v61 = vld [vmem:[%s2625_s7 + $0xc8] ss:$12 sps:$4 sm:$0xff]   ;;  %v135_v2 = vld [vmem:[%s2626_s4] sm:$0x3] }
  0x12   :  { %476 = vmatpush1.bf16.msra.mxu0 %v1840_v22  ;;  %v2251_v1 = vsub.s32 0, %v2248_v63  ;;  %v2257_v3 = vsub.s32 1, %v2248_v63  ;;  %vm459_vm6 = vcmask 195584   ;;  %v1875_v15 = vld [vmem:[%s2625_s7] ss:$12 sps:$4 sm:$0xff]   ;;  %vm957_vm7 = vcmask 392192  }
  0x13   :  { %477 = vmatprep.subr.bf16.mxu0 %v1846_v23  ;;  %v1903_v16 = vld [vmem:[%s2625_s7 + $0x8] ss:$12 sps:$4 sm:$0xff]   ;;  %v1907_v20 = vld [vmem:[%s2625_s7 + $0xe0] ss:$12 sps:$4 sm:$0xff]   ;;  %v1878_v21 = vld [vmem:[%s2625_s7 + $0x18] ss:$12 sps:$4 sm:$0xff]  }
  0x14   :  { %216 = vmatpush1.bf16.msra.mxu1 %v202_v17  ;;  %v141_v4 = vrot.slane %v135_v2, %v2251_v1  ;;  %v145_v5 = vrot.slane %v135_v2, %v2257_v3  ;;  %v1880_v19 = vld [vmem:[%s2625_s7 + $0x1c] ss:$12 sps:$4 sm:$0xff]   ;;  %v1908_v22 = vld [vmem:[%s2625_s7 + $0x20] ss:$12 sps:$4 sm:$0xff]   ;;  %v1924_v54 = vld [vmem:[%s2625_s7 + $0x138] ss:$12 sps:$4 sm:$0xff]  }
  0x15   :  { %514 = vmatprep.subr.bf16.mxu1 %v2020_v18  ;;  %v1883_v23 = vld [vmem:[%s2625_s7 + $0x34] ss:$12 sps:$4 sm:$0xff]   ;;  %v1933_v57 = vld [vmem:[%s2625_s7 + $0x98] ss:$12 sps:$4 sm:$0xff]   ;;  %vm1587_vm8 = vcmask 7168  }
  0x16   :  { %478 = vmatpush1.bf16.msra.mxu0 %v1844_v24  ;;  %v1912_v24 = vld [vmem:[%s2625_s7 + $0xf8] ss:$12 sps:$4 sm:$0xff]   ;;  %v1931_v56 = vld [vmem:[%s2625_s7 + $0x154] ss:$12 sps:$4 sm:$0xff]  }
  0x17   :  { %479 = vmatprep.subr.bf16.mxu0 %v1850_v25  ;;  %v1881_v25 = vld [vmem:[%s2625_s7 + $0x30] ss:$12 sps:$4 sm:$0xff]   ;;  %v1934_v62 = vld [vmem:[%s2625_s7 + $0x168] ss:$12 sps:$4 sm:$0xff]  }
  0x18   :  { %v1941_v2 = vld [vmem:[%s2625_s7 + $0x184] ss:$12 sps:$4 sm:$0xff]  }
  0x1a   :  { %480 = vmatpush1.bf16.msra.mxu0 %v1848_v26  ;;  %v1913_v26 = vld [vmem:[%s2625_s7 + $0x38] ss:$12 sps:$4 sm:$0xff]  }
  0x1b   :  { %481 = vmatprep.subr.bf16.mxu0 %v1854_v27  ;;  %v1886_v27 = vld [vmem:[%s2625_s7 + $0x4c] ss:$12 sps:$4 sm:$0xff]  }
  0x1e   :  { %482 = vmatpush1.bf16.msra.mxu0 %v1852_v28  ;;  %v1917_v28 = vld [vmem:[%s2625_s7 + $0x110] ss:$12 sps:$4 sm:$0xff]  }
  0x1f   :  { %483 = vmatprep.subr.bf16.mxu0 %v1858_v29  ;;  %v1884_v29 = vld [vmem:[%s2625_s7 + $0x48] ss:$12 sps:$4 sm:$0xff]  }
  0x22   :  { %484 = vmatpush1.bf16.msra.mxu0 %v1856_v30  ;;  %v1918_v30 = vld [vmem:[%s2625_s7 + $0x50] ss:$12 sps:$4 sm:$0xff]  }
  0x23   :  { %485 = vmatprep.subr.bf16.mxu0 %v1862_v31  ;;  %v1889_v31 = vld [vmem:[%s2625_s7 + $0x64] ss:$12 sps:$4 sm:$0xff]  }
  0x26   :  { %486 = vmatpush1.bf16.msra.mxu0 %v1860_v32  ;;  %v1922_v32 = vld [vmem:[%s2625_s7 + $0x128] ss:$12 sps:$4 sm:$0xff]  }
  0x27   :  { %487 = vmatprep.subr.bf16.mxu0 %v1866_v33  ;;  %v1887_v33 = vld [vmem:[%s2625_s7 + $0x60] ss:$12 sps:$4 sm:$0xff]  }
  0x2a   :  { %488 = vmatpush1.bf16.msra.mxu0 %v1864_v34  ;;  %v1923_v34 = vld [vmem:[%s2625_s7 + $0x68] ss:$12 sps:$4 sm:$0xff]  }
  0x2b   :  { %489 = vmatprep.subr.bf16.mxu0 %v1870_v51  ;;  %v1921_v51 = vld [vmem:[%s2625_s7 + $0x124] ss:$12 sps:$4 sm:$0xff]  }
  0x2e   :  { %490 = vmatpush1.bf16.msra.mxu0 %v1868_v52  ;;  %v1919_v52 = vld [vmem:[%s2625_s7 + $0x120] ss:$12 sps:$4 sm:$0xff]  }
  0x2f   :  { %1640 = vmatprep.subr.msk.bf16.mxu0 %vm463_vm5, %v1638_v55  ;;  %v1932_v55 = vld [vmem:[%s2625_s7 + $0x158] ss:$12 sps:$4 sm:$0xff]  }
  0x32   :  { %492 = vmatpush1.bf16.msra.mxu0 %v465_v58  ;;  %v1929_v58 = vld [vmem:[%s2625_s7 + $0x150] ss:$12 sps:$4 sm:$0xff]  }
  0x33   :  { %961 = vmatprep.subr.bf16.mxu0 %v1877_v60  ;;  %v1936_v60 = vld [vmem:[%s2625_s7 + $0x16c] ss:$12 sps:$4 sm:$0xff]  }
  0xe0   :  { %v118_v36 = vpop.f32.mrb[0].mxu0 }
  0xe1   :  { %v119_v37 = vadd.f32 %v1593_v35, %v118_v36  ;;  %v1791_v38 = vpop.f32.mrb[1].mxu0  ;;  %v1892_v35 = vld [vmem:[%s2625_s7 + $0x7c] ss:$12 sps:$4 sm:$0xff]   ;;  %v1927_v36 = vld [vmem:[%s2625_s7 + $0x140] ss:$12 sps:$4 sm:$0xff]  }
  0xe2   :  { %v121_v39 = vpop.f32.mrb[2].mxu0  ;;  %v1928_v38 = vld [vmem:[%s2625_s7 + $0x80] ss:$12 sps:$4 sm:$0xff]  }
  0xe3   :  { %v124_v40 = vmax.f32 %v119_v37, 0.0  ;;  %v1792_v41 = vpop.f32.mrb[3].mxu0  ;;  %v1890_v37 = vld [vmem:[%s2625_s7 + $0x78] ss:$12 sps:$4 sm:$0xff]   ;;  %v1895_v39 = vld [vmem:[%s2625_s7 + $0x94] ss:$12 sps:$4 sm:$0xff]  }
  0xe4   :  { %v1898_v41 = vld [vmem:[%s2625_s7 + $0xac] ss:$12 sps:$4 sm:$0xff]  }
  0xe5   :  { %v136_v43 = vpack.c.bf16 %v124_v40, %v124_v40  ;;  %v1893_v40 = vld [vmem:[%s2625_s7 + $0x90] ss:$12 sps:$4 sm:$0xff]  }
  0xe7   :  { %1609 = vmatmul.mubr.msk.bf16.vlgmr.msra.gmra.mrb[0].mxu1 %vm196_vm4, %v136_v43  ;;  %v1901_v43 = vld [vmem:[%s2625_s7 + $0xc4] ss:$12 sps:$4 sm:$0xff]  }
  0xe8   :  { %515 = vmatpush1.bf16.msra.mxu1 %v1839_v42  ;;  %v1896_v42 = vld [vmem:[%s2625_s7 + $0xa8] ss:$12 sps:$4 sm:$0xff]  }
  0xe9   :  { %516 = vmatprep.subr.bf16.mxu1 %v2020_v18 }
  0xec   :  { %517 = vmatpush1.bf16.msra.mxu1 %v1843_v44  ;;  %v1899_v44 = vld [vmem:[%s2625_s7 + $0xc0] ss:$12 sps:$4 sm:$0xff]  }
  0xed   :  { %518 = vmatprep.subr.bf16.mxu1 %v2020_v18 }
  0xf0   :  { %519 = vmatpush1.bf16.msra.mxu1 %v1847_v45  ;;  %v1906_v45 = vld [vmem:[%s2625_s7 + $0xdc] ss:$12 sps:$4 sm:$0xff]  }
  0xf1   :  { %520 = vmatprep.subr.bf16.mxu1 %v2020_v18 }
  0xf4   :  { %521 = vmatpush1.bf16.msra.mxu1 %v1851_v46  ;;  %v1904_v46 = vld [vmem:[%s2625_s7 + $0xd8] ss:$12 sps:$4 sm:$0xff]  }
  0xf5   :  { %522 = vmatprep.subr.bf16.mxu1 %v2020_v18 }
  0xf8   :  { %523 = vmatpush1.bf16.msra.mxu1 %v1855_v47  ;;  %v1911_v47 = vld [vmem:[%s2625_s7 + $0xf4] ss:$12 sps:$4 sm:$0xff]  }
  0xf9   :  { %524 = vmatprep.subr.bf16.mxu1 %v2020_v18 }
  0xfc   :  { %525 = vmatpush1.bf16.msra.mxu1 %v1859_v48  ;;  %v1909_v48 = vld [vmem:[%s2625_s7 + $0xf0] ss:$12 sps:$4 sm:$0xff]  }
  0xfd   :  { %526 = vmatprep.subr.bf16.mxu1 %v2020_v18 }
 0x100   :  { %527 = vmatpush1.bf16.msra.mxu1 %v1863_v49  ;;  %v1916_v49 = vld [vmem:[%s2625_s7 + $0x10c] ss:$12 sps:$4 sm:$0xff]  }
 0x101   :  { %528 = vmatprep.subr.bf16.mxu1 %v2020_v18 }
 0x104   :  { %529 = vmatpush1.bf16.msra.mxu1 %v1867_v50  ;;  %v1914_v50 = vld [vmem:[%s2625_s7 + $0x108] ss:$12 sps:$4 sm:$0xff]  }
 0x105   :  { %530 = vmatprep.subr.bf16.mxu1 %v2020_v18 }
 0x108   :  { %531 = vmatpush1.bf16.msra.mxu1 %v1871_v53  ;;  %v1926_v53 = vld [vmem:[%s2625_s7 + $0x13c] ss:$12 sps:$4 sm:$0xff]  }
 0x109   :  { %532 = vmatprep.subr.bf16.mxu1 %v2020_v18 }
 0x10c   :  { %533 = vmatpush1.bf16.msra.mxu1 %v471_v59  ;;  %v1937_v59 = vld [vmem:[%s2625_s7 + $0x170] ss:$12 sps:$4 sm:$0xff]  }
 0x10d   :  { %1757 = vmatprep.subr.bf16.mxu1 %v1902_v61  ;;  %v1938_v61 = vld [vmem:[%s2625_s7 + $0xb0] ss:$12 sps:$4 sm:$0xff]  }
 0x1ba   :  { %v241_v6 = vpop.f32.mrb[0].mxu1 }
 0x1bb   :  { %v242_v7 = vadd.f32 %v241_v6, %v141_v4  ;;  %v243_v8 = vpop.f32.mrb[1].mxu1  ;;  %v288_v4 = vld [vmem:[%s2628_s6] sm:$0x7] }
 0x1bc   :  { %v244_v9 = vadd.f32 %v243_v8, %v145_v5  ;;  %v245_v10 = vpop.f32.mrb[2].mxu1  ;;  %v295_v5 = vrot.slane %v288_v4, %v2251_v1  ;;  %v299_v6 = vrot.slane %v288_v4, %v2257_v3 }
 0x1bd   :  { %v248_v11 = vmax.f32 %v242_v7, 0.0  ;;  %v246_v12 = vpop.f32.mrb[3].mxu1 }
 0x1be   :  { %v249_v13 = vmax.f32 %v244_v9, 0.0 }
 0x1bf   :  { %v289_v17 = vpack.c.bf16 %v248_v11, %v248_v11 }
 0x1c0   :  { %v290_v14 = vpack.c.bf16 %v249_v13, %v249_v13 }
 0x1c2   :  { %1641 = vmatprep.mubr.msk.bf16.mxu0 %vm459_vm6, %v290_v14  ;;  %1642 = vmatprep.mubr.msk.bf16.mxu1 %vm459_vm6, %v290_v14 }
 0x1c3   :  { %506 = vmatmul.mubr.bf16.vlgmr.msra.gmra.mrb[4].mxu0 %v289_v17  ;;  %547 = vmatmul.mubr.bf16.vlgmr.msra.gmra.mrb[4].mxu1 %v289_v17 }
 0x1c4   :  { %962 = vmatpush1.bf16.msra.mxu0 %v1875_v15  ;;  %1758 = vmatpush3.bf16.msra.mxu1 %v1903_v16  ;;  %v302_v16 = vsub.s32 2, %v2248_v63 }
 0x1c5   :  { %963 = vmatprep.subr.bf16.mxu0 %v1880_v19  ;;  %1759 = vmatprep.subr.bf16.mxu1 %v1907_v20 }
 0x1c8   :  { %964 = vmatpush1.bf16.msra.mxu0 %v1878_v21  ;;  %1760 = vmatpush3.bf16.msra.mxu1 %v1908_v22  ;;  %v1939_v22 = vld [vmem:[%s2625_s7 + $0x180] ss:$12 sps:$4 sm:$0xff]  }
 0x1c9   :  { %965 = vmatprep.subr.bf16.mxu0 %v1883_v23  ;;  %1761 = vmatprep.subr.bf16.mxu1 %v1912_v24  ;;  %v1942_v23 = vld [vmem:[%s2625_s7 + $0x188] ss:$12 sps:$4 sm:$0xff]  }
 0x1cc   :  { %966 = vmatpush1.bf16.msra.mxu0 %v1881_v25  ;;  %1762 = vmatpush3.bf16.msra.mxu1 %v1913_v26  ;;  %v303_v25 = vrot.slane %v288_v4, %v302_v16  ;;  %v1945_v26 = vld [vmem:[%s2625_s7 + $0x19c] ss:$12 sps:$4 sm:$0xff]  }
 0x1cd   :  { %967 = vmatprep.subr.bf16.mxu0 %v1886_v27  ;;  %1763 = vmatprep.subr.bf16.mxu1 %v1917_v28  ;;  %v1943_v27 = vld [vmem:[%s2625_s7 + $0x198] ss:$12 sps:$4 sm:$0xff]   ;;  %v1946_v28 = vld [vmem:[%s2625_s7 + $0x1a0] ss:$12 sps:$4 sm:$0xff]   ;;  %v1998_v4 = vld [vmem:[%s2627_s9 + $0xf4] ss:$8 sps:$4 sm:$0xff]  }
 0x1d0   :  { %968 = vmatpush1.bf16.msra.mxu0 %v1884_v29  ;;  %1764 = vmatpush3.bf16.msra.mxu1 %v1918_v30  ;;  %v1949_v30 = vld [vmem:[%s2625_s7 + $0x1b4] ss:$12 sps:$4 sm:$0xff]  }
 0x1d1   :  { %969 = vmatprep.subr.bf16.mxu0 %v1889_v31  ;;  %1765 = vmatprep.subr.bf16.mxu1 %v1922_v32  ;;  %v1947_v31 = vld [vmem:[%s2625_s7 + $0x1b0] ss:$12 sps:$4 sm:$0xff]   ;;  %v1950_v32 = vld [vmem:[%s2625_s7 + $0x1b8] ss:$12 sps:$4 sm:$0xff]  }
 0x1d4   :  { %970 = vmatpush1.bf16.msra.mxu0 %v1887_v33  ;;  %1766 = vmatpush3.bf16.msra.mxu1 %v1923_v34  ;;  %v1953_v34 = vld [vmem:[%s2627_s9 + $0x4] ss:$8 sps:$4 sm:$0xff]  }
 0x1d5   :  { %971 = vmatprep.subr.bf16.mxu0 %v1892_v35  ;;  %1767 = vmatprep.subr.bf16.mxu1 %v1927_v36  ;;  %v1951_v35 = vld [vmem:[%s2627_s9] ss:$8 sps:$4 sm:$0xff]  }
 0x1d8   :  { %972 = vmatpush1.bf16.msra.mxu0 %v1890_v37  ;;  %1768 = vmatpush3.bf16.msra.mxu1 %v1928_v38  ;;  %v1956_v37 = vld [vmem:[%s2627_s9 + $0x14] ss:$8 sps:$4 sm:$0xff]   ;;  %v1959_v38 = vld [vmem:[%s2627_s9 + $0x24] ss:$8 sps:$4 sm:$0xff]  }
 0x1d9   :  { %973 = vmatprep.subr.bf16.mxu0 %v1895_v39  ;;  %1769 = vmatprep.subr.bf16.mxu1 %v1932_v55  ;;  %v1957_v39 = vld [vmem:[%s2627_s9 + $0x20] ss:$8 sps:$4 sm:$0xff]  }
 0x1da   :  { %v1981_v55 = vld [vmem:[%s2627_s9 + $0xa0] ss:$8 sps:$4 sm:$0xff]  }
 0x1dc   :  { %974 = vmatpush1.bf16.msra.mxu0 %v1893_v40  ;;  %1770 = vmatpush3.bf16.msra.mxu1 %v1933_v57  ;;  %v1962_v40 = vld [vmem:[%s2627_s9 + $0x34] ss:$8 sps:$4 sm:$0xff]  }
 0x1dd   :  { %975 = vmatprep.subr.bf16.mxu0 %v1898_v41  ;;  %1771 = vmatprep.subr.bf16.mxu1 %v1937_v59  ;;  %v1960_v41 = vld [vmem:[%s2627_s9 + $0x30] ss:$8 sps:$4 sm:$0xff]   ;;  %v1986_v57 = vld [vmem:[%s2627_s9 + $0xb4] ss:$8 sps:$4 sm:$0xff]   ;;  %v1989_v59 = vld [vmem:[%s2627_s9 + $0xc4] ss:$8 sps:$4 sm:$0xff]  }
 0x1e0   :  { %976 = vmatpush1.bf16.msra.mxu0 %v1896_v42  ;;  %1772 = vmatpush3.bf16.msra.mxu1 %v1938_v61  ;;  %v1965_v42 = vld [vmem:[%s2627_s9 + $0x44] ss:$8 sps:$4 sm:$0xff]   ;;  %v1990_v61 = vld [vmem:[%s2627_s9 + $0xd0] ss:$8 sps:$4 sm:$0xff]  }
 0x1e1   :  { %977 = vmatprep.subr.bf16.mxu0 %v1901_v43  ;;  %1793 = vmatprep.subr.bf16.mxu1 %v2018_v0  ;;  %v1963_v43 = vld [vmem:[%s2627_s9 + $0x40] ss:$8 sps:$4 sm:$0xff]  }
 0x1e4   :  { %978 = vmatpush1.bf16.msra.mxu0 %v1899_v44  ;;  %v1968_v44 = vld [vmem:[%s2627_s9 + $0x54] ss:$8 sps:$4 sm:$0xff]  }
 0x1e5   :  { %979 = vmatprep.subr.bf16.mxu0 %v1906_v45  ;;  %v1966_v45 = vld [vmem:[%s2627_s9 + $0x50] ss:$8 sps:$4 sm:$0xff]  }
 0x1e8   :  { %980 = vmatpush1.bf16.msra.mxu0 %v1904_v46  ;;  %v1971_v46 = vld [vmem:[%s2627_s9 + $0x64] ss:$8 sps:$4 sm:$0xff]  }
 0x1e9   :  { %981 = vmatprep.subr.bf16.mxu0 %v1911_v47  ;;  %v1969_v47 = vld [vmem:[%s2627_s9 + $0x60] ss:$8 sps:$4 sm:$0xff]  }
 0x1ec   :  { %982 = vmatpush1.bf16.msra.mxu0 %v1909_v48  ;;  %v1974_v48 = vld [vmem:[%s2627_s9 + $0x74] ss:$8 sps:$4 sm:$0xff]  }
 0x1ed   :  { %983 = vmatprep.subr.bf16.mxu0 %v1916_v49  ;;  %v1972_v49 = vld [vmem:[%s2627_s9 + $0x70] ss:$8 sps:$4 sm:$0xff]  }
 0x1f0   :  { %984 = vmatpush1.bf16.msra.mxu0 %v1914_v50  ;;  %v1977_v50 = vld [vmem:[%s2627_s9 + $0x84] ss:$8 sps:$4 sm:$0xff]  }
 0x1f1   :  { %985 = vmatprep.subr.bf16.mxu0 %v1921_v51  ;;  %v1975_v51 = vld [vmem:[%s2627_s9 + $0x80] ss:$8 sps:$4 sm:$0xff]  }
 0x1f4   :  { %986 = vmatpush1.bf16.msra.mxu0 %v1919_v52  ;;  %v1980_v52 = vld [vmem:[%s2627_s9 + $0x94] ss:$8 sps:$4 sm:$0xff]  }
 0x1f5   :  { %987 = vmatprep.subr.bf16.mxu0 %v1926_v53  ;;  %v1978_v53 = vld [vmem:[%s2627_s9 + $0x90] ss:$8 sps:$4 sm:$0xff]  }
 0x1f8   :  { %988 = vmatpush1.bf16.msra.mxu0 %v1924_v54  ;;  %v1983_v54 = vld [vmem:[%s2627_s9 + $0xa4] ss:$8 sps:$4 sm:$0xff]  }
 0x1f9   :  { %989 = vmatprep.subr.bf16.mxu0 %v1931_v56  ;;  %v1984_v56 = vld [vmem:[%s2627_s9 + $0xb0] ss:$8 sps:$4 sm:$0xff]  }
 0x1fc   :  { %990 = vmatpush1.bf16.msra.mxu0 %v1929_v58  ;;  %v1987_v58 = vld [vmem:[%s2627_s9 + $0xc0] ss:$8 sps:$4 sm:$0xff]  }
 0x1fd   :  { %991 = vmatprep.subr.bf16.mxu0 %v1936_v60  ;;  %v1992_v60 = vld [vmem:[%s2627_s9 + $0xd4] ss:$8 sps:$4 sm:$0xff]  }
 0x200   :  { %992 = vmatpush1.bf16.msra.mxu0 %v1934_v62  ;;  %v1995_v62 = vld [vmem:[%s2627_s9 + $0xe4] ss:$8 sps:$4 sm:$0xff]  }
 0x201   :  { %1002 = vmatprep.subr.bf16.mxu0 %v1941_v2  ;;  %v1993_v2 = vld [vmem:[%s2627_s9 + $0xe0] ss:$8 sps:$4 sm:$0xff]  }
 0x296   :  { %v507_v7 = vpop.f32.mrb[4].mxu0  ;;  %v548_v8 = vpop.f32.mrb[4].mxu1 }
 0x297   :  { %v508_v9 = vadd.f32 %v507_v7, %v295_v5  ;;  %v509_v10 = vpop.f32.mrb[5].mxu0  ;;  %v550_v11 = vpop.f32.mrb[5].mxu1  ;;  %v549_v29 = vadd.f32 %v548_v8, %v303_v25  ;;  %v1996_v5 = vld [vmem:[%s2627_s9 + $0xf0] ss:$8 sps:$4 sm:$0xff]   ;;  %v2008_v7 = vld [vmem:[%s2629_s11] sm:$0xff]   ;;  %v2009_v8 = vld [vmem:[%s2629_s11 + $0x8] sm:$0xff]  }
 0x298   :  { %v510_v12 = vadd.f32 %v509_v10, %v299_v6  ;;  %v511_v13 = vpop.f32.mrb[6].mxu0  ;;  %v551_v14 = vpop.f32.mrb[6].mxu1  ;;  %v2001_v6 = vld [vmem:[%s2627_s9 + $0x104] ss:$8 sps:$4 sm:$0xff]   ;;  %v2011_v10 = vld [vmem:[%s2629_s11 + $0x18] sm:$0xff]  }
 0x299   :  { %v554_v15 = vmax.f32 %v508_v9, 0.0  ;;  %v512_v17 = vpop.f32.mrb[7].mxu0  ;;  %v552_v19 = vpop.f32.mrb[7].mxu1  ;;  %v556_v33 = vmax.f32 %v549_v29, 0.0  ;;  %v2010_v9 = vld [vmem:[%s2629_s11 + $0x10] sm:$0xff]   ;;  %v2012_v11 = vld [vmem:[%s2629_s11 + $0x20] sm:$0xff]  }
 0x29a   :  { %v555_v20 = vmax.f32 %v510_v12, 0.0  ;;  %v2013_v12 = vld [vmem:[%s2629_s11 + $0x28] sm:$0xff]   ;;  %v2014_v13 = vld [vmem:[%s2629_s11 + $0x30] sm:$0xff]   ;;  %v2015_v14 = vld [vmem:[%s2629_s11 + $0x38] sm:$0xff]  }
 0x29b   :  { %v634_v24 = vpack.c.bf16 %v554_v15, %v554_v15  ;;  %v636_v36 = vpack.c.bf16 %v556_v33, %v556_v33 }
 0x29c   :  { %v635_v21 = vpack.c.bf16 %v555_v20, %v555_v20 }
 0x29e   :  { %993 = vmatprep.mubr.bf16.mxu0 %v635_v21  ;;  %1075 = vmatprep.mubr.bf16.mxu1 %v635_v21 }
 0x29f   :  { %994 = vmatmul.mubr.bf16.vlgmr.msra.gmra.mrb[8].mxu0 %v634_v24  ;;  %1076 = vmatmul.mubr.bf16.vlgmr.msra.gmra.mrb[8].mxu1 %v634_v24 }
 0x2a0   :  { %1003 = vmatpush1.bf16.msra.mxu0 %v1939_v22  ;;  %1794 = vmatpush3.bf16.msra.mxu1 %v1942_v23  ;;  %v633_v22 = vld [vmem:[%s2630_s8] sm:$0x7] }
 0x2a1   :  { %1004 = vmatprep.subr.bf16.mxu0 %v1945_v26  ;;  %1795 = vmatprep.subr.bf16.mxu1 %v2018_v0  ;;  %v649_v23 = vrot.slane %v633_v22, %v302_v16  ;;  %v641_v24 = vrot.slane %v633_v22, %v2251_v1  ;;  %v645_v25 = vrot.slane %v633_v22, %v2257_v3  ;;  %v1999_v16 = vld [vmem:[%s2627_s9 + $0x100] ss:$8 sps:$4 sm:$0xff]  }
 0x2a2   :  { %1799 = vmatprep.mubr.msk.bf16.mxu1 %vm2019_vm0, %v2018_v0  ;;  %1034 = vmatprep.mubr.bf16.mxu0 %v2020_v18 }
 0x2a4   :  { %1005 = vmatpush1.bf16.msra.mxu0 %v1943_v27  ;;  %1796 = vmatpush3.bf16.msra.mxu1 %v1946_v28 }
 0x2a5   :  { %1006 = vmatprep.subr.bf16.mxu0 %v1949_v30  ;;  %1797 = vmatprep.subr.bf16.mxu1 %v2018_v0  ;;  %v1954_v0 = vld [vmem:[%s2627_s9 + $0x10] ss:$8 sps:$4 sm:$0xff]  }
 0x2a8   :  { %1007 = vmatpush1.bf16.msra.mxu0 %v1947_v31  ;;  %1798 = vmatpush3.bf16.msra.mxu1 %v1950_v32 }
 0x2a9   :  { %1372 = vmatprep.subr.bf16.mxu1 %v1953_v34  ;;  %1547 = vmatprep.subr.bf16.mxu0 %v2020_v18 }
 0x2ab   :  { %1800 = vmatmul.mubr.msk.bf16.vlgmr.msra.gmra.mrb[12].mxu1 %vm957_vm7, %v636_v36  ;;  %1700 = vmatmul.mubr.msk.bf16.vlgmr.msra.gmra.mrb[8].mxu0 %vm957_vm7, %v636_v36 }
 0x2ac   :  { %1373 = vmatpush1.bf16.msra.mxu1 %v1951_v35  ;;  %1548 = vmatpush1.bf16.msra.mxu0 %v2008_v7 }
 0x2ad   :  { %1374 = vmatprep.subr.bf16.mxu1 %v1956_v37  ;;  %1549 = vmatprep.subr.bf16.mxu0 %v2020_v18 }
 0x2b0   :  { %1375 = vmatpush1.bf16.msra.mxu1 %v1954_v0  ;;  %1550 = vmatpush1.bf16.msra.mxu0 %v2009_v8 }
 0x2b1   :  { %1376 = vmatprep.subr.bf16.mxu1 %v1959_v38  ;;  %1551 = vmatprep.subr.bf16.mxu0 %v2020_v18 }
 0x2b4   :  { %1377 = vmatpush1.bf16.msra.mxu1 %v1957_v39  ;;  %1552 = vmatpush1.bf16.msra.mxu0 %v2010_v9 }
 0x2b5   :  { %1378 = vmatprep.subr.bf16.mxu1 %v1962_v40  ;;  %1553 = vmatprep.subr.bf16.mxu0 %v2020_v18  ;;  %v2004_v40 = vld [vmem:[%s2627_s9 + $0x114] ss:$8 sps:$4 sm:$0xff]  }
 0x2b8   :  { %1379 = vmatpush1.bf16.msra.mxu1 %v1960_v41  ;;  %1554 = vmatpush1.bf16.msra.mxu0 %v2011_v10  ;;  %v2002_v41 = vld [vmem:[%s2627_s9 + $0x110] ss:$8 sps:$4 sm:$0xff]  }
 0x2b9   :  { %1380 = vmatprep.subr.bf16.mxu1 %v1965_v42  ;;  %1555 = vmatprep.subr.bf16.mxu0 %v2020_v18  ;;  %v2007_v42 = vld [vmem:[%s2627_s9 + $0x124] ss:$8 sps:$4 sm:$0xff]  }
 0x2bc   :  { %1381 = vmatpush1.bf16.msra.mxu1 %v1963_v43  ;;  %1556 = vmatpush1.bf16.msra.mxu0 %v2012_v11  ;;  %v2005_v43 = vld [vmem:[%s2627_s9 + $0x120] ss:$8 sps:$4 sm:$0xff]  }
 0x2bd   :  { %1382 = vmatprep.subr.bf16.mxu1 %v1968_v44  ;;  %1557 = vmatprep.subr.bf16.mxu0 %v2020_v18 }
 0x2c0   :  { %1383 = vmatpush1.bf16.msra.mxu1 %v1966_v45  ;;  %1558 = vmatpush1.bf16.msra.mxu0 %v2013_v12 }
 0x2c1   :  { %1384 = vmatprep.subr.bf16.mxu1 %v1971_v46  ;;  %1559 = vmatprep.subr.bf16.mxu0 %v2020_v18  ;;  %v2016_v46 = vld [vmem:[%s2629_s11 + $0x40] sm:$0xff]  }
 0x2c4   :  { %1385 = vmatpush1.bf16.msra.mxu1 %v1969_v47  ;;  %1560 = vmatpush1.bf16.msra.mxu0 %v2014_v13  ;;  %v2017_v47 = vld [vmem:[%s2629_s11 + $0x48] ss:$0 sps:$4 sm:$0xff]  }
 0x2c5   :  { %1386 = vmatprep.subr.bf16.mxu1 %v1974_v48  ;;  %1561 = vmatprep.subr.bf16.mxu0 %v2020_v18  ;;  %v1545_v48 = vsel %vm463_vm5, %v2017_v47, 0 }
 0x2c8   :  { %1387 = vmatpush1.bf16.msra.mxu1 %v1972_v49  ;;  %1562 = vmatpush1.bf16.msra.mxu0 %v2015_v14  ;;  %v18_v49 = vstv %s2631_s12 }
 0x2c9   :  { %1388 = vmatprep.subr.bf16.mxu1 %v1977_v50  ;;  %1563 = vmatprep.subr.bf16.mxu0 %v2020_v18  ;;  %19 = vst [vmem:[#allocation2] sm:$0x1] %v18_v49  ;;  %v1164_v50 = vld [vmem:[%s2632_s10] sm:$0x3] }
 0x2cc   :  { %1389 = vmatpush1.bf16.msra.mxu1 %v1975_v51  ;;  %1564 = vmatpush1.bf16.msra.mxu0 %v2016_v46  ;;  %v1172_v51 = vrot.slane %v1164_v50, %v2251_v1 }
 0x2cd   :  { %1390 = vmatprep.subr.bf16.mxu1 %v1980_v52  ;;  %1565 = vmatprep.subr.bf16.mxu0 %v2020_v18 }
 0x2d0   :  { %1391 = vmatpush1.bf16.msra.mxu1 %v1978_v53  ;;  %1566 = vmatpush1.bf16.msra.mxu0 %v1545_v48 }
 0x2d1   :  { %1392 = vmatprep.subr.bf16.mxu1 %v1983_v54 }
 0x2d4   :  { %1393 = vmatpush1.bf16.msra.mxu1 %v1981_v55 }
 0x2d5   :  { %1394 = vmatprep.subr.bf16.mxu1 %v1986_v57 }
 0x2d8   :  { %1395 = vmatpush1.bf16.msra.mxu1 %v1984_v56 }
 0x2d9   :  { %1396 = vmatprep.subr.bf16.mxu1 %v1989_v59 }
 0x2dc   :  { %1397 = vmatpush1.bf16.msra.mxu1 %v1987_v58 }
 0x2dd   :  { %1398 = vmatprep.subr.bf16.mxu1 %v1992_v60 }
 0x2e0   :  { %1399 = vmatpush1.bf16.msra.mxu1 %v1990_v61 }
 0x2e1   :  { %1400 = vmatprep.subr.bf16.mxu1 %v1995_v62  ;;  %v1741_v62 = vld [vmem:[#allocation2] ss:$0 sm:$0xff] }
 0x2e4   :  { %1401 = vmatpush1.bf16.msra.mxu1 %v1993_v2 }
 0x2e5   :  { %1402 = vmatprep.subr.bf16.mxu1 %v1998_v4 }
 0x2e8   :  { %1403 = vmatpush1.bf16.msra.mxu1 %v1996_v5 }
 0x2e9   :  { %1413 = vmatprep.subr.bf16.mxu1 %v2001_v6 }
 0x372   :  { %v1773_v15 = vpop.f32.mrb[8].mxu1 }
 0x373   :  { %v1774_v17 = vpop.f32.mrb[9].mxu1 }
 0x374   :  { %v1775_v19 = vadd.f32 %v1774_v17, %v1773_v15  ;;  %v1776_v20 = vpop.f32.mrb[10].mxu1 }
 0x375   :  { %v1777_v21 = vpop.f32.mrb[11].mxu1 }
 0x376   :  { %v1078_v26 = vadd.f32 %v1775_v19, %v649_v23 }
 0x37e   :  { %v1117_v27 = vpop.f32.mrb[12].mxu1  ;;  %v1036_v28 = vpop.f32.mrb[8].mxu0 }
 0x37f   :  { %v1118_v29 = vadd.f32 %v1117_v27, %v1078_v26  ;;  %v1803_v30 = vadd.f32 %v1036_v28, %v641_v24  ;;  %v1801_v31 = vpop.f32.mrb[13].mxu1  ;;  %v1038_v32 = vpop.f32.mrb[9].mxu0 }
 0x380   :  { %v1804_v33 = vadd.f32 %v1038_v32, %v645_v25  ;;  %v1120_v34 = vpop.f32.mrb[14].mxu1  ;;  %v1040_v35 = vpop.f32.mrb[10].mxu0 }
 0x381   :  { %v1123_v36 = vmax.f32 %v1803_v30, 0.0  ;;  %v1802_v37 = vpop.f32.mrb[15].mxu1  ;;  %v1041_v0 = vpop.f32.mrb[11].mxu0  ;;  %v1125_v44 = vmax.f32 %v1118_v29, 0.0 }
 0x382   :  { %v1124_v38 = vmax.f32 %v1804_v33, 0.0 }
 0x383   :  { %v1165_v39 = vpack.c.bf16 %v1123_v36, %v1123_v36  ;;  %v1167_v45 = vpack.c.bf16 %v1125_v44, %v1125_v44 }
 0x384   :  { %v1166_v63 = vpack.c.bf16 %v1124_v38, %v1124_v38 }
 0x386   :  { %1404 = vmatprep.mubr.bf16.mxu1 %v1166_v63 }
 0x387   :  { %1405 = vmatmul.mubr.bf16.vlgmr.msra.gmra.mrb[16].mxu1 %v1165_v39 }
 0x388   :  { %1414 = vmatpush1.bf16.msra.mxu1 %v1999_v16  ;;  %1445 = vmatprep.mubr.bf16.mxu1 %v2020_v18  ;;  %v1176_v18 = vrot.slane %v1164_v50, %v2257_v3 }
 0x389   :  { %1415 = vmatprep.subr.bf16.mxu1 %v2004_v40 }
 0x38c   :  { %1416 = vmatpush1.bf16.msra.mxu1 %v2002_v41 }
 0x38d   :  { %1417 = vmatprep.subr.bf16.mxu1 %v2007_v42 }
 0x390   :  { %1418 = vmatpush1.bf16.msra.mxu1 %v2005_v43 }
 0x393   :  { %1740 = vmatmul.mubr.msk.bf16.vlgmr.msra.gmra.mrb[16].mxu1 %vm957_vm7, %v1167_v45 }
 0x466   :  { %v1447_v52 = vpop.f32.mrb[16].mxu1 }
 0x467   :  { %v1805_v53 = vadd.f32 %v1447_v52, %v1172_v51  ;;  %v1449_v54 = vpop.f32.mrb[17].mxu1 }
 0x468   :  { %v1806_v55 = vadd.f32 %v1449_v54, %v1176_v18  ;;  %v1451_v56 = vpop.f32.mrb[18].mxu1 }
 0x469   :  { %v1454_v57 = vmax.f32 %v1805_v53, 0.0  ;;  %v1452_v58 = vpop.f32.mrb[19].mxu1 }
 0x46a   :  { %v1455_v59 = vmax.f32 %v1806_v55, 0.0 }
 0x46b   :  { %v1476_v61 = vpack.c.bf16 %v1454_v57, %v1454_v57 }
 0x46c   :  { %v1477_v60 = vpack.c.bf16 %v1455_v59, %v1455_v59 }
 0x46e   :  { %1752 = vmatprep.mubr.msk.bf16.mxu0 %vm459_vm6, %v1477_v60 }
 0x46f   :  { %1580 = vmatmul.mubr.bf16.vlgmr.msra.gmra.mrb[12].mxu0 %v1476_v61 }
 0x542   :  { %v1581_v2 = vpop.f32.mrb[12].mxu0 }
 0x543   :  { %v1582_v4 = vadd.f32 %v1741_v62, %v1581_v2  ;;  %v1583_v1 = vpop.f32.mrb[13].mxu0 }
 0x544   :  { %v1584_v5 = vpop.f32.mrb[14].mxu0 }
 0x545   :  { %1588 = vst.msk [vmem:[%s2633_s13] sm:$0xff] %vm1587_vm8, %v1582_v4  ;;  %v1585_v3 = vpop.f32.mrb[15].mxu0 }

</bundles_post_ra>
